<compile_context>
chip_gen: v6e
topology: v6e:2x2x1
jax: 0.10.0
libtpu: 0.0.40
codegen_flags: <defaults>
</compile_context>

<pallas_src>
import functools
import math

import jax
import jax.numpy as jnp
from jax.experimental import pallas as pl
from jax.experimental.pallas import tpu as pltpu

_LANE = 128


# --------------------------------------------------------------------------
# Kernel
# --------------------------------------------------------------------------
def _gabor_kernel(x_ref, o_ref, *, omega, sigma):
    """Elementwise WIRE/Gabor nonlinearity: cos(omega*x) * exp(-(sigma*x)^2)."""
    x = x_ref[...]
    if x.dtype != jnp.float32:
        x = x.astype(jnp.float32)
    t = sigma * x                                   # reuse; avoids integer_pow
    y = jnp.cos(omega * x) * jnp.exp(-(t * t))      # exp -> EUP slot (free-ish)
    o_ref[...] = y.astype(o_ref.dtype)


# --------------------------------------------------------------------------
# Hardware introspection (best-effort; safe fallbacks)
# --------------------------------------------------------------------------
def _vmem_capacity_bytes():
    try:
        info = pltpu.get_tpu_info()
        for attr in ("vmem_capacity_bytes", "vmem_bytes"):
            v = getattr(info, attr, None)
            if isinstance(v, int) and v > 0:
                return v
    except Exception:
        pass
    return 64 << 20  # conservative: v7x per-TC VMEM


def _num_tensorcores():
    """TensorCores sharing the 'parallel' grid axis (megacore). Fallback: 1."""
    try:
        dev = jax.devices()[0]
        n = getattr(dev, "num_cores", None)
        if isinstance(n, int) and n > 0:
            return n
        kind = str(getattr(dev, "device_kind", "")).lower()
        if ("v4" in kind) or ("v5p" in kind) or ("7" in kind):
            return 2
    except Exception:
        pass
    return 1


# --------------------------------------------------------------------------
# Tiling plan
# --------------------------------------------------------------------------
def _round_up(n, m):
    return ((n + m - 1) // m) * m


def _plan_row_blocking(rows, lanes, itemsize, num_cores, block_target_bytes):
    """Pick block_rows / grid steps for a (rows, lanes) elementwise problem."""
    sub = max(8, 32 // itemsize)                     # sublane multiple per dtype
    # VMEM footprint of one tile row (lane dim is padded to 128 in VMEM).
    row_bytes = _round_up(lanes, _LANE) * itemsize
    cand = max(sub, (block_target_bytes // row_bytes) // sub * sub)

    if cand >= rows:
        block_rows, steps = rows, 1                  # one full-extent block
    else:
        block_rows = cand                            # sub-aligned; last block masked
        steps = pl.cdiv(rows, block_rows)

    # Megacore only: give both TensorCores balanced work. No-op on v5e/v6e.
    if num_cores > 1 and rows > sub:
        if steps == 1:
            steps = num_cores
        elif steps % num_cores:
            steps += num_cores - (steps % num_cores)
        block_rows = max(sub, _round_up(pl.cdiv(rows, steps), sub))
        steps = pl.cdiv(rows, block_rows)

    return block_rows, steps


# --------------------------------------------------------------------------
# Public wrapper
# --------------------------------------------------------------------------
def complex_gabor_layer(x, omega=10.0, sigma=10.0):
    """WIRE ComplexGaborLayer.forward: cos(omega*x) * exp(-(sigma*x)**2)."""
    orig_shape = x.shape
    total = math.prod(orig_shape) if orig_shape else 1
    if total == 0:
        return x  # degenerate empty input

    itemsize = jnp.dtype(x.dtype).itemsize
    sub = max(8, 32 // itemsize)
    num_cores = _num_tensorcores()
    vmem_cap = _vmem_capacity_bytes()
    block_target = (8 << 20) if vmem_cap >= (100 << 20) else (4 << 20)

    padded_tail = 0
    fast_path = (
        x.ndim >= 2
        and x.shape[-1] % _LANE == 0
        and _round_up(x.shape[-1], _LANE) * itemsize * sub <= block_target
    )
    if fast_path:
        # Hidden-layer style [..., 512]: trailing dim is the lane axis.
        # Collapsing contiguous leading dims is layout-free; no pad, no slice.
        lanes = x.shape[-1]
        rows = total // lanes
        x2d = x.reshape(rows, lanes)
    else:
        # General path: flatten; pad only to a multiple of the lane width
        # (<= lanes-1 elements), not to a multiple of the block.
        lanes = 1024 if total >= 1024 * sub else _LANE
        rows = pl.cdiv(total, lanes)
        padded_tail = rows * lanes - total
        x_flat = x.reshape(-1)
        if padded_tail:
            x_flat = jnp.pad(x_flat, (0, padded_tail))
        x2d = x_flat.reshape(rows, lanes)

    block_rows, steps = _plan_row_blocking(rows, lanes, itemsize, num_cores, block_target)

    block_vmem_bytes = block_rows * _round_up(lanes, _LANE) * itemsize
    # in + out, double-buffered, plus headroom; capped so one setting works on
    # every generation (v7x TC has only 64 MiB physical VMEM).
    vmem_limit = int(min(max(4 * block_vmem_bytes + (8 << 20), 16 << 20), 48 << 20))

    kernel = functools.partial(_gabor_kernel, omega=float(omega), sigma=float(sigma))

    y2d = pl.pallas_call(
        kernel,
        out_shape=jax.ShapeDtypeStruct((rows, lanes), x.dtype),
        grid=(steps,),
        in_specs=[pl.BlockSpec((block_rows, lanes), lambda i: (i, 0))],
        out_specs=pl.BlockSpec((block_rows, lanes), lambda i: (i, 0)),
        compiler_params=pltpu.CompilerParams(
            dimension_semantics=("parallel",),
            vmem_limit_bytes=vmem_limit,
        ),
        cost_estimate=pl.CostEstimate(
            flops=4 * total,
            transcendentals=2 * total,
            bytes_accessed=2 * total * itemsize,
        ),
    )(x2d)

    if fast_path:
        return y2d.reshape(orig_shape)
    y_flat = y2d.reshape(-1)
    if padded_tail:
        y_flat = y_flat[:total]
    return y_flat.reshape(orig_shape)


def reference(x, omega=10.0, sigma=10.0):
    return jnp.cos(omega * x) * jnp.exp(-(sigma * x) ** 2)


if __name__ == "__main__":
    key = jax.random.PRNGKey(0)
    k0, k1 = jax.random.split(key)

    # Small demo shapes consistent with the module:
    #   is_first=True -> layer sees [..., input_dim=5]  (general path)
    #   hidden layers  -> [..., width=512]              (lane-dense fast path)
    x_small = jax.random.normal(k0, (64, 5), dtype=jnp.float32) * 0.1
    x_wide = jax.random.normal(k1, (16, 512), dtype=jnp.float32) * 0.1

    y_small = jax.block_until_ready(complex_gabor_layer(x_small, omega=10.0, sigma=10.0))
    y_wide = jax.block_until_ready(complex_gabor_layer(x_wide, omega=10.0, sigma=10.0))

    assert y_small.shape == x_small.shape
    assert y_wide.shape == x_wide.shape
    assert jnp.allclose(y_small, reference(x_small), atol=1e-5, rtol=1e-5), "mismatch (small)"
    assert jnp.allclose(y_wide, reference(x_wide), atol=1e-5, rtol=1e-5), "mismatch (wide)"

    print("KERNEL_OK")
</pallas_src>

<mosaic_0001>
module attributes {stable_mosaic.version = 11 : i64} {
  func.func @_gabor_kernel(%arg0: i32, %arg1: memref<3x128xf32, #tpu.memory_space<vmem>>, %arg2: memref<3x128xf32, #tpu.memory_space<vmem>>) attributes {dimension_semantics = [#tpu.dimension_semantics<parallel>], iteration_bounds = array<i64: 1>, scalar_prefetch = 0 : i64, scratch_operands = 0 : i64, tpu.core_type = #tpu.core_type<tc>, window_params = [{transform_indices = @transform_0, window_bounds = array<i64: 3, 128>}, {transform_indices = @transform_1, window_bounds = array<i64: 3, 128>}]} {
    %c0 = arith.constant 0 : index
    %c0_0 = arith.constant 0 : index
    %0 = vector.load %arg1[%c0, %c0_0] : memref<3x128xf32, #tpu.memory_space<vmem>>, vector<3x128xf32>
    %cst = arith.constant 1.000000e+01 : f32
    %1 = vector.broadcast %cst : f32 to vector<3x128xf32>
    %2 = arith.mulf %1, %0 : vector<3x128xf32>
    %cst_1 = arith.constant 1.000000e+01 : f32
    %3 = vector.broadcast %cst_1 : f32 to vector<3x128xf32>
    %4 = arith.mulf %3, %0 : vector<3x128xf32>
    %5 = math.cos %4 : vector<3x128xf32>
    %6 = arith.mulf %2, %2 : vector<3x128xf32>
    %cst_2 = arith.constant 0.000000e+00 : f32
    %7 = vector.broadcast %cst_2 : f32 to vector<3x128xf32>
    %8 = arith.subf %7, %6 : vector<3x128xf32>
    %9 = math.exp %8 : vector<3x128xf32>
    %10 = arith.mulf %5, %9 : vector<3x128xf32>
    %c0_3 = arith.constant 0 : index
    %c0_4 = arith.constant 0 : index
    %11 = vector.load %arg2[%c0_3, %c0_4] : memref<3x128xf32, #tpu.memory_space<vmem>>, vector<3x128xf32>
    tpu.vector_store %arg2[%c0_3, %c0_4], %10 {strides = array<i32>} : memref<3x128xf32, #tpu.memory_space<vmem>>, vector<3x128xf32>,
    return
  }
  func.func @transform_0(%arg0: i32) -> (i32, i32) {
    %c0_i32 = arith.constant 0 : i32
    %c0_i32_0 = arith.constant 0 : i32
    return %arg0, %c0_i32 : i32, i32
  }
  func.func @transform_1(%arg0: i32) -> (i32, i32) {
    %c0_i32 = arith.constant 0 : i32
    %c0_i32_0 = arith.constant 0 : i32
    return %arg0, %c0_i32 : i32, i32
  }
}

</mosaic_0001>

<bundles_post_ra>
// kernel: tpu_custom_call.1
= control target key start
LH: loop header
LB: loop body
LE: loop exit
PB: predicated region body
PF: predicated region fallthrough
CT: control target
= control target key end

     0   :  { %6 = vsyncpa [#allocation3], 0  ;;  %s260_s0 = inlined_call_operand.hbm [shape: f32[3,128], index: 0, kind: input, shape index: {}]   ;;  %s261_s1 = inlined_call_operand.hbm [shape: f32[3,128], index: 1, kind: output, shape index: {}]  }
   0x1   :  { %7 = vsyncpa [#allocation4], 0  ;;  %s213_s6 = smov [#allocation2]  }
   0x2   :  { %s14_s7 = sshll.u32 %s213_s6, 4  ;;  %s15_s7 = int_to_ptr.vmem [resolvable:$true] %s14_s7 }
   0x3   :  { %s177_s8 = scalar_lea.vmem %s15_s7, 64  ;;  %p182_p1 = scmp.lt.s32.totalorder %s15_s7, %s15_s7 }
   0x4   :  { %p178_p0 = scmp.ne.s32.totalorder %s15_s7, %s177_s8  ;;  %p183_p2 = scmp.lt.s32.totalorder %s177_s8, %s177_s8 }
   0x6   :  { %p184_p3 = por %p183_p2, %p182_p1 }
   0x8   :  { %p185_p4 = pnand %p184_p3, %p178_p0 }
   0xa   :  { %188 = shalt.err (!%p185_p4)
}
   0xb   :  { %17 = dma.hbm_to_vmem [thread:$0]  %s260_s0, 64, %s15_s7, [#allocation3]  }
   0xc   :  { %209 = dma.done.wait [#allocation3], 64  }
   0xd   :  { %210 = vsyncadd [#allocation3], 4294967232  ;;  %v21_v0 = vld [vmem:[#allocation2] sm:$0x7]  ;;  %v214_v13 = vmov 683565275  }
   0xe   :  { %v234_v1 = vmul.f32 10.0, %v21_v0  ;;  %v215_v15 = vmov 2475754826   ;;  %v216_v17 = vmov 2131351028   ;;  %s220_s0 = smov [#allocation5]  }
   0xf   :  { %v217_v19 = vmov 2102212464   ;;  %v218_v21 = vmov 920167782   ;;  %v219_v28 = vmov 1326507024  }
  0x10   :  { %v26_v2 = vand.u32 2139095040, %v234_v1  ;;  %v23_v4 = vand.u32 2147483647, %v234_v1  ;;  %vm25_vm7 = vcmp.lt.s32.totalorder %v234_v1, 0  ;;  %vm115_vm12 = vweird.f32 %v234_v1  ;;  %s138_s11 = sshll.u32 %s220_s0, 4  ;;  %s139_s11 = int_to_ptr.vmem [resolvable:$true] %s138_s11 }
  0x11   :  { %s189_s12 = scalar_lea.vmem %s139_s11, 64  ;;  %p194_p6 = scmp.lt.s32.totalorder %s139_s11, %s139_s11 }
  0x12   :  { %v27_v3 = vshrl.u32 %v26_v2, 23  ;;  %v30_v7 = vand.u32 8388607, %v23_v4  ;;  %vm24_vm8 = vcmp.le.f32.partialorder %v23_v4, 0.7853982  ;;  %p190_p5 = scmp.ne.s32.totalorder %s139_s11, %s189_s12  ;;  %p195_p7 = scmp.lt.s32.totalorder %s189_s12, %s189_s12 }
  0x14   :  { %v147_v5 = vadd.s32 4294967169, %v27_v3  ;;  %v31_v10 = vor.u32 8388608, %v30_v7  ;;  %p196_p8 = por %p195_p7, %p194_p6 }
  0x16   :  { %v33_v6 = vadd.s32 1, %v147_v5  ;;  %v71_v30 = vshll.u32 %v31_v10, 8  ;;  %p197_p9 = pnand %p196_p8, %p190_p5 }
  0x18   :  { %vm34_vm0 = vcmp.gt.s32.totalorder %v33_v6, 0 }
  0x19   :  { %v35_v8 = vsel %vm34_vm0, %v33_v6, 0 }
  0x1a   :  { %v37_v9 = vand.u32 31, %v35_v8  ;;  %v36_v11 = vshrl.u32 %v35_v8, 5 }
  0x1c   :  { %v38_v12 = vsub.s32 32, %v37_v9  ;;  %v40_v14 = vshll.u32 %v214_v13, %v37_v9  ;;  %v43_v16 = vshll.u32 %v215_v15, %v37_v9  ;;  %v46_v18 = vshll.u32 %v216_v17, %v37_v9 }
  0x1d   :  { %v49_v20 = vshll.u32 %v217_v19, %v37_v9  ;;  %v52_v22 = vshll.u32 %v218_v21, %v37_v9  ;;  %vm55_vm1 = vcmp.lt.s32.totalorder %v36_v11, 1  ;;  %vm58_vm2 = vcmp.lt.s32.totalorder %v36_v11, 4 }
  0x1e   :  { %v39_v23 = vshrl.u32 %v214_v13, %v38_v12  ;;  %v41_v24 = vshrl.u32 %v215_v15, %v38_v12  ;;  %v44_v25 = vshrl.u32 %v216_v17, %v38_v12  ;;  %v47_v26 = vshrl.u32 %v217_v19, %v38_v12 }
  0x1f   :  { %v50_v27 = vshrl.u32 %v218_v21, %v38_v12  ;;  %v53_v29 = vshrl.u32 %v219_v28, %v38_v12  ;;  %vm56_vm3 = vcmp.lt.s32.totalorder %v36_v11, 2  ;;  %vm57_vm4 = vcmp.lt.s32.totalorder %v36_v11, 3 }
  0x20   :  { %v42_v31 = vor.u32 %v41_v24, %v40_v14  ;;  %v45_v32 = vor.u32 %v44_v25, %v43_v16  ;;  %v48_v33 = vor.u32 %v47_v26, %v46_v18  ;;  %v126_v14 = vmul.f32 %v234_v1, %v234_v1 }
  0x21   :  { %v51_v34 = vor.u32 %v50_v27, %v49_v20  ;;  %v54_v35 = vor.u32 %v53_v29, %v52_v22 }
  0x22   :  { %v59_v36 = vsel %vm55_vm1, %v39_v23, %v42_v31  ;;  %v60_v37 = vsel %vm58_vm2, %v48_v33, 2102212464  ;;  %v63_v38 = vsel %vm55_vm1, %v42_v31, %v45_v32  ;;  %v67_v39 = vsel %vm55_vm1, %v45_v32, %v48_v33 }
  0x23   :  { %v61_v40 = vsel %vm57_vm4, %v45_v32, %v60_v37  ;;  %v64_v41 = vsel %vm58_vm2, %v51_v34, 920167782  ;;  %v68_v42 = vsel %vm58_vm2, %v54_v35, 1326507024  ;;  %v127_v17 = vsub.f32 0.0, %v126_v14 }
  0x24   :  { %v65_v43 = vsel %vm57_vm4, %v48_v33, %v64_v41  ;;  %v69_v44 = vsel %vm57_vm4, %v51_v34, %v68_v42  ;;  %v62_v45 = vsel %vm56_vm3, %v59_v36, %v61_v40 }
  0x25   :  { %v66_v46 = vsel %vm56_vm3, %v63_v38, %v65_v43  ;;  %v70_v47 = vsel %vm56_vm3, %v67_v39, %v69_v44  ;;  %v78_v52 = vmul.u32 %v71_v30, %v62_v45  ;;  %v128_v21 = vmul.f32 1.442695, %v127_v17 }
  0x26   :  { %v240_v48 = vmul.u32.u64.low %v71_v30, %v70_v47  ;;  %v241_v49 = vmul.u32.u64.high %v71_v30, %v70_v47, %v240_v48  ;;  %v243_v50 = vmul.u32.u64.low %v71_v30, %v66_v46  ;;  %v244_v51 = vmul.u32.u64.high %v71_v30, %v66_v46, %v243_v50 }
  0x28   :  { %vm80_vm5 = vc.u32 %v241_v49, %v243_v50  ;;  %v81_v53 = vadd.s32 1, %v244_v51  ;;  %v79_v0 = vadd.s32 %v243_v50, %v241_v49 }
  0x2a   :  { %v82_v54 = vsel %vm80_vm5, %v81_v53, %v244_v51 }
  0x2b   :  { %v83_v55 = vadd.s32 %v82_v54, %v78_v52 }
  0x2d   :  { %v84_v56 = vadd.s32 536870912, %v83_v55 }
  0x2f   :  { %v85_v57 = vshrl.u32 %v84_v56, 30 }
  0x31   :  { %v86_v58 = vshll.u32 %v85_v57, 30  ;;  %v109_v19 = vsub.s32 4, %v85_v57 }
  0x33   :  { %v87_v59 = vsub.s32 %v83_v55, %v86_v58  ;;  %v110_v22 = vsel %vm25_vm7, %v109_v19, %v85_v57 }
  0x34   :  { %v112_v23 = vsel %vm24_vm8, 0, %v110_v22 }
  0x35   :  { %v89_v60 = vsub.s32 0, %v87_v59  ;;  %v116_v24 = vand.u32 3, %v112_v23 }
  0x37   :  { %v148_v61 = vmin.u32 %v89_v60, %v87_v59  ;;  %vm121_vm9 = vcmp.eq.s32.totalorder %v116_v24, 2  ;;  %vm118_vm10 = vcmp.eq.s32.totalorder %v116_v24, 0  ;;  %vm117_vm11 = vcmp.lt.s32.totalorder %v116_v24, 2 }
  0x39   :  { %v91_v62 = vclz %v148_v61 }
  0x3b   :  { %v149_v63 = vadd.s32 4294967294, %v91_v62 }
  0x3d   :  { %vm150_vm6 = vcmp.lt.s32.totalorder %v149_v63, 0 }
  0x3e   :  { %v94_v2 = vsel %vm150_vm6, 0, %v149_v63 }
  0x3f   :  { %v95_v3 = vsub.s32 32, %v94_v2  ;;  %v96_v5 = vshll.u32 %v87_v59, %v94_v2  ;;  %v99_v6 = vsub.s32 4294967266, %v94_v2 }
  0x41   :  { %v97_v7 = vshrl.u32 %v79_v0, %v95_v3  ;;  %v100_v8 = vadd.s32 127, %v99_v6 }
  0x43   :  { %v98_v9 = vor.u32 %v97_v7, %v96_v5  ;;  %v101_v10 = vshll.u32 %v100_v8, 23 }
  0x45   :  { %v102_v11 = vor.u32 4788187, %v101_v10  ;;  %v105_v12 = vcvt.s32.f32 %v98_v9 }
  0x47   :  { %v103_v13 = vand.u32 2147483647, %v102_v11 }
  0x49   :  { %v106_v15 = vmul.f32 %v105_v12, %v103_v13 }
  0x4b   :  { %v107_v16 = vxor.u32 2147483648, %v106_v15 }
  0x4d   :  { %v108_v18 = vsel %vm25_vm7, %v107_v16, %v106_v15 }
  0x4e   :  { %v111_v20 = vsel %vm24_vm8, %v234_v1, %v108_v18 }
  0x4f   :  { %163 = vcosq.f32 %v111_v20 }
  0x50   :  { %165 = vsinq.f32 %v111_v20 }
  0x51   :  { %167 = vpow2.f32 %v128_v21 }
  0x5c   :  { %v164_v25 = vpop.eup %163 }
  0x5d   :  { %v166_v26 = vpop.eup %165  ;;  %v122_v27 = vxor.u32 2147483648, %v164_v25 }
  0x5e   :  { %v119_v4 = vxor.u32 2147483648, %v166_v26  ;;  %v168_v29 = vpop.eup %167 }
  0x5f   :  { %v123_v28 = vsel %vm121_vm9, %v122_v27, %v166_v26 }
  0x60   :  { %v120_v30 = vsel %vm118_vm10, %v164_v25, %v119_v4 }
  0x61   :  { %v124_v31 = vsel %vm117_vm11, %v120_v30, %v123_v28 }
  0x62   :  { %v125_v32 = vsel %vm115_vm12, nan, %v124_v31 }
  0x63   :  { %v130_v33 = vmul.f32 %v168_v29, %v125_v32 }
  0x65   :  { %131 = vst [vmem:[#allocation5] sm:$0x7] %v130_v33 }
  0x66   :  { %200 = shalt.err (!%p197_p9)
}
  0x67   :  { %141 = dma.vmem_to_hbm [thread:$0]  %s139_s11, 64, %s261_s1, [#allocation4]  }
  0x68   :  { %211 = dma.done.wait [#allocation4], 64  }
  0x69   :  { %212 = vsyncadd [#allocation4], 4294967232 }
  0x6a   :  { %145 = vsyncpa [#allocation3], 1 }
  0x6b   :  { %146 = vsyncpa [#allocation4], 1 }

</bundles_post_ra>
